<compile_context>
chip_gen: v7x
topology: tpu7x:2x2x1
jax: 0.10.0
libtpu: 0.0.40
codegen_flags: <defaults>
</compile_context>

<pallas_src>
import functools

import jax
import jax.numpy as jnp
from jax.experimental import pallas as pl
from jax.experimental.pallas import tpu as pltpu

_LANES = 128
_VMEM_BUDGET = 40 * 1024 * 1024   # keep double-buffered tiles well under v7x's 64 MiB VMEM


def _round_up(x, m):
    return ((x + m - 1) // m) * m


def _tile_vmem_bytes(bb, d, in_itemsize):
    # 2 inputs x 2 pipeline buffers + double-buffered (1, bb) f32 output ...
    io = 2 * (2 * bb * d * in_itemsize) + 2 * bb * 4
    # ... plus an upper bound on f32 temporaries in the body (upcast operands,
    # product, transposed product).  The compiler reuses some of this.
    temps = 4 * bb * d * 4
    return io + temps


def mf_kernel(u_ref, v_ref, o_ref):
    # u_ref, v_ref: (bb, D) tiles in the natural gather layout.
    # o_ref: (1, bb) lane-dense output row.
    u = u_ref[...].astype(jnp.float32)
    v = v_ref[...].astype(jnp.float32)
    prod = u * v                                            # VPU elementwise, (bb, D)
    # Relayout (bb, D) -> (D, bb) on the XLU (hidden under the input DMAs),
    # then sublane-reduce so per-row sums land lane-dense in the (1, bb) row.
    o_ref[...] = jnp.sum(jnp.transpose(prod), axis=0, keepdims=True)


@functools.partial(jax.jit, static_argnames=("block_b",))
def mf_forward(u_idx, v_idx, user_table, item_table, *, block_b=16384):
    """MF forward: (user_table[u] * item_table[v]).sum(-1).

    u_idx, v_idx : int32 [B]
    user_table   : f32/bf16 [num_users + 1, D]  (row 0 is the padding row)
    item_table   : f32/bf16 [num_items + 1, D]
    returns      : float32 [B]
    """
    B = u_idx.shape[0]
    D = user_table.shape[1]
    in_itemsize = jnp.dtype(user_table.dtype).itemsize

    # ---- pick the batch tile --------------------------------------------
    bb = min(int(block_b), _round_up(B, _LANES))
    bb = _round_up(max(bb, _LANES), _LANES)
    # Shrink if double-buffered tiles would blow the VMEM budget.
    while bb > _LANES and _tile_vmem_bytes(bb, D, in_itemsize) > _VMEM_BUDGET:
        bb = _round_up(bb // 2, _LANES)
    # Even the tiles across the grid so index padding stays below one tile.
    grid_n = pl.cdiv(B, bb)
    bb = _round_up(pl.cdiv(B, grid_n), _LANES)
    # Keep >= 2 grid steps when the batch allows it: the "parallel" axis can
    # then shard across v7x's two TensorCores (one extra ~0.35us step on
    # single-TC chips, up to ~2x on v7x for medium batches).
    if grid_n == 1 and bb >= 2 * _LANES:
        bb = _round_up(pl.cdiv(bb, 2), _LANES)
        grid_n = pl.cdiv(B, bb)
    b_pad = grid_n * bb

    # ---- pad only the (tiny) index vectors --------------------------------
    pad = b_pad - B
    u_p = jnp.pad(u_idx, (0, pad))
    v_p = jnp.pad(v_idx, (0, pad))

    # Gather in the natural [B, D] layout (no wrapper transpose).
    # TODO(synk): an in-kernel gather (scalar-prefetched indices + per-row
    # DMAs) only pays off for rows >= 512 B (D >= 128 f32); at D=32 XLA's
    # gather wins, so it stays outside the kernel.
    u_g = user_table[u_p]
    v_g = item_table[v_p]

    vmem_limit = min(
        56 * 1024 * 1024,
        max(32 * 1024 * 1024, _tile_vmem_bytes(bb, D, in_itemsize) + (8 << 20)),
    )

    cost = pl.CostEstimate(
        flops=2 * b_pad * D,
        transcendentals=0,
        bytes_accessed=2 * b_pad * D * in_itemsize + b_pad * 4,
    )

    out = pl.pallas_call(
        mf_kernel,
        out_shape=jax.ShapeDtypeStruct((1, b_pad), jnp.float32),
        grid=(grid_n,),
        in_specs=[
            pl.BlockSpec((bb, D), lambda i: (i, 0)),
            pl.BlockSpec((bb, D), lambda i: (i, 0)),
        ],
        out_specs=pl.BlockSpec((1, bb), lambda i: (0, i)),
        compiler_params=pltpu.CompilerParams(
            dimension_semantics=("parallel",),
            allow_input_fusion=[True, True],
            vmem_limit_bytes=int(vmem_limit),
        ),
        cost_estimate=cost,
    )(u_g, v_g)
    return out[0, :B]


def make_embedding(key, num_rows, emb_size, dtype=jnp.float32):
    """Stand-in for nn.Embedding(..., padding_idx=0): N(0,1), row 0 zeroed."""
    tbl = jax.random.normal(key, (num_rows, emb_size), dtype=jnp.float32)
    return tbl.at[0].set(0.0).astype(dtype)


if __name__ == "__main__":
    num_users, num_items, emb_size = 10, 20, 32

    key = jax.random.PRNGKey(0)
    k_user, k_item, k_u, k_v = jax.random.split(key, 4)

    user_table = make_embedding(k_user, num_users + 1, emb_size)
    item_table = make_embedding(k_item, num_items + 1, emb_size)

    # Case 1: small batch (single 128-wide padded lane block).
    batch = 8
    u = jax.random.randint(k_u, (batch,), 0, num_users + 1, dtype=jnp.int32)
    v = jax.random.randint(k_v, (batch,), 0, num_items + 1, dtype=jnp.int32)
    out = jax.block_until_ready(mf_forward(u, v, user_table, item_table))
    ref = jnp.sum(user_table[u] * item_table[v], axis=1)
    assert out.shape == (batch,)
    assert jnp.allclose(out, ref, atol=1e-5, rtol=1e-5), "case 1 mismatch"

    # Case 2: non-multiple batch + small explicit tile -> multi-block grid and
    # the index-padded tail.
    batch2 = 300
    k_u2, k_v2 = jax.random.split(k_v)
    u2 = jax.random.randint(k_u2, (batch2,), 0, num_users + 1, dtype=jnp.int32)
    v2 = jax.random.randint(k_v2, (batch2,), 0, num_items + 1, dtype=jnp.int32)
    out2 = jax.block_until_ready(
        mf_forward(u2, v2, user_table, item_table, block_b=128))
    ref2 = jnp.sum(user_table[u2] * item_table[v2], axis=1)
    assert out2.shape == (batch2,)
    assert jnp.allclose(out2, ref2, atol=1e-5, rtol=1e-5), "case 2 mismatch"

    # Case 3: bf16 tables (half HBM traffic) + default tiling -> exercises the
    # in-kernel upcast and the >=2-grid-step split for v7x.
    user_bf = user_table.astype(jnp.bfloat16)
    item_bf = item_table.astype(jnp.bfloat16)
    out3 = jax.block_until_ready(mf_forward(u2, v2, user_bf, item_bf))
    ref3 = jnp.sum(user_bf[u2].astype(jnp.float32)
                   * item_bf[v2].astype(jnp.float32), axis=1)
    assert out3.shape == (batch2,)
    assert jnp.allclose(out3, ref3, atol=1e-4, rtol=1e-4), "case 3 mismatch"

    print("KERNEL_OK")
</pallas_src>

<mosaic_0001>
module attributes {stable_mosaic.version = 11 : i64} {
  func.func @mf_kernel(%arg0: i32, %arg1: memref<128x32xf32, #tpu.memory_space<vmem>>, %arg2: memref<128x32xf32, #tpu.memory_space<vmem>>, %arg3: memref<1x128xf32, #tpu.memory_space<vmem>>) attributes {dimension_semantics = [#tpu.dimension_semantics<parallel>], iteration_bounds = array<i64: 1>, scalar_prefetch = 0 : i64, scratch_operands = 0 : i64, tpu.core_type = #tpu.core_type<tc>, window_params = [{transform_indices = @transform_0, window_bounds = array<i64: 128, 32>}, {transform_indices = @transform_1, window_bounds = array<i64: 128, 32>}, {transform_indices = @transform_2, window_bounds = array<i64: 1, 128>}]} {
    %c0 = arith.constant 0 : index
    %c0_0 = arith.constant 0 : index
    %0 = vector.load %arg1[%c0, %c0_0] : memref<128x32xf32, #tpu.memory_space<vmem>>, vector<128x32xf32>
    %c0_1 = arith.constant 0 : index
    %c0_2 = arith.constant 0 : index
    %1 = vector.load %arg2[%c0_1, %c0_2] : memref<128x32xf32, #tpu.memory_space<vmem>>, vector<128x32xf32>
    %2 = arith.mulf %0, %1 : vector<128x32xf32>
    %3 = tpu.transpose %2, [1, 0] : vector<128x32xf32> -> vector<32x128xf32>
    %cst = arith.constant dense<0.000000e+00> : vector<128xf32>
    %4 = vector.multi_reduction <add>, %3, %cst [0] : vector<32x128xf32> to vector<128xf32>
    %5 = vector.shape_cast %4 : vector<128xf32> to vector<1x128xf32>
    %c0_3 = arith.constant 0 : index
    %c0_4 = arith.constant 0 : index
    %6 = vector.load %arg3[%c0_3, %c0_4] : memref<1x128xf32, #tpu.memory_space<vmem>>, vector<1x128xf32>
    tpu.vector_store %arg3[%c0_3, %c0_4], %5 {strides = array<i32>} : memref<1x128xf32, #tpu.memory_space<vmem>>, vector<1x128xf32>,
    return
  }
  func.func @transform_0(%arg0: i32) -> (i32, i32) {
    %c0_i32 = arith.constant 0 : i32
    %c0_i32_0 = arith.constant 0 : i32
    return %arg0, %c0_i32 : i32, i32
  }
  func.func @transform_1(%arg0: i32) -> (i32, i32) {
    %c0_i32 = arith.constant 0 : i32
    %c0_i32_0 = arith.constant 0 : i32
    return %arg0, %c0_i32 : i32, i32
  }
  func.func @transform_2(%arg0: i32) -> (i32, i32) {
    %c0_i32 = arith.constant 0 : i32
    %c0_i32_0 = arith.constant 0 : i32
    return %c0_i32, %arg0 : i32, i32
  }
}

</mosaic_0001>

<bundles_post_ra>
// kernel: mf_forward.1
= control target key start
LH: loop header
LB: loop body
LE: loop exit
PB: predicated region body
PF: predicated region fallthrough
CT: control target
= control target key end

     0   :  { %s219_s0 = inlined_call_operand.vmem [shape: f32[128,32], index: 0, kind: input, shape index: {}]   ;;  %s220_s1 = inlined_call_operand.vmem [shape: f32[128,32], index: 1, kind: input, shape index: {}]   ;;  %s221_s2 = inlined_call_operand.vmem [shape: f32[1,128], index: 2, kind: output, shape index: {}]  }
   0x1   :  { %v11_v0 = vld [vmem:[%s219_s0] sm:$0xff]  ;;  %v12_v2 = vld [vmem:[%s219_s0 + $0x8] sm:$0xff]  ;;  %v13_v6 = vld [vmem:[%s219_s0 + $0x10] sm:$0xff] }
   0x2   :  { %v27_v1 = vld [vmem:[%s220_s1] sm:$0xff]  ;;  %v28_v4 = vld [vmem:[%s220_s1 + $0x8] sm:$0xff]  ;;  %v29_v7 = vld [vmem:[%s220_s1 + $0x10] sm:$0xff] }
   0x3   :  { %v43_v3 = vmul.f32 %v27_v1, %v11_v0  ;;  %v44_v5 = vmul.f32 %v28_v4, %v12_v2  ;;  %v45_v8 = vmul.f32 %v29_v7, %v13_v6  ;;  %v14_v9 = vld [vmem:[%s219_s0 + $0x18] sm:$0xff]  ;;  %v15_v12 = vld [vmem:[%s219_s0 + $0x20] sm:$0xff]  ;;  %v16_v15 = vld [vmem:[%s219_s0 + $0x28] sm:$0xff] }
   0x4   :  { %v30_v10 = vld [vmem:[%s220_s1 + $0x18] sm:$0xff]  ;;  %v31_v13 = vld [vmem:[%s220_s1 + $0x20] sm:$0xff]  ;;  %v32_v16 = vld [vmem:[%s220_s1 + $0x28] sm:$0xff] }
   0x5   :  { %59 = vxpose.xlu0.b32.start [1/16] (narrow) %v43_v3, 32  ;;  %v46_v11 = vmul.f32 %v30_v10, %v14_v9  ;;  %v47_v14 = vmul.f32 %v31_v13, %v15_v12  ;;  %v48_v17 = vmul.f32 %v32_v16, %v16_v15  ;;  %v17_v18 = vld [vmem:[%s219_s0 + $0x30] sm:$0xff]  ;;  %v18_v21 = vld [vmem:[%s219_s0 + $0x38] sm:$0xff]  ;;  %v19_v24 = vld [vmem:[%s219_s0 + $0x40] sm:$0xff] }
   0x6   :  { %v33_v19 = vld [vmem:[%s220_s1 + $0x30] sm:$0xff]  ;;  %v34_v22 = vld [vmem:[%s220_s1 + $0x38] sm:$0xff]  ;;  %v35_v25 = vld [vmem:[%s220_s1 + $0x40] sm:$0xff] }
   0x7   :  { %v49_v20 = vmul.f32 %v33_v19, %v17_v18  ;;  %v50_v23 = vmul.f32 %v34_v22, %v18_v21  ;;  %v51_v26 = vmul.f32 %v35_v25, %v19_v24  ;;  %v20_v27 = vld [vmem:[%s219_s0 + $0x48] sm:$0xff]  ;;  %v21_v30 = vld [vmem:[%s219_s0 + $0x50] sm:$0xff]  ;;  %v22_v33 = vld [vmem:[%s219_s0 + $0x58] sm:$0xff] }
   0x8   :  { %v36_v28 = vld [vmem:[%s220_s1 + $0x48] sm:$0xff]  ;;  %v37_v31 = vld [vmem:[%s220_s1 + $0x50] sm:$0xff]  ;;  %v38_v34 = vld [vmem:[%s220_s1 + $0x58] sm:$0xff] }
   0x9   :  { %60 = vxpose.xlu0.b32.cont [2/16] (narrow) %v44_v5, 32  ;;  %v52_v29 = vmul.f32 %v36_v28, %v20_v27  ;;  %v53_v32 = vmul.f32 %v37_v31, %v21_v30  ;;  %v54_v35 = vmul.f32 %v38_v34, %v22_v33  ;;  %v23_v36 = vld [vmem:[%s219_s0 + $0x60] sm:$0xff]  ;;  %v24_v39 = vld [vmem:[%s219_s0 + $0x68] sm:$0xff]  ;;  %v25_v42 = vld [vmem:[%s219_s0 + $0x70] sm:$0xff] }
   0xa   :  { %v39_v37 = vld [vmem:[%s220_s1 + $0x60] sm:$0xff]  ;;  %v40_v40 = vld [vmem:[%s220_s1 + $0x68] sm:$0xff]  ;;  %v41_v43 = vld [vmem:[%s220_s1 + $0x70] sm:$0xff] }
   0xb   :  { %v55_v38 = vmul.f32 %v39_v37, %v23_v36  ;;  %v56_v41 = vmul.f32 %v40_v40, %v24_v39  ;;  %v57_v44 = vmul.f32 %v41_v43, %v25_v42  ;;  %v26_v45 = vld [vmem:[%s219_s0 + $0x78] sm:$0xff] }
   0xc   :  { %v42_v46 = vld [vmem:[%s220_s1 + $0x78] sm:$0xff] }
   0xd   :  { %61 = vxpose.xlu0.b32.cont [3/16] (narrow) %v45_v8, 32  ;;  %v58_v47 = vmul.f32 %v42_v46, %v26_v45 }
  0x11   :  { %62 = vxpose.xlu0.b32.cont [4/16] (narrow) %v46_v11, 32 }
  0x15   :  { %63 = vxpose.xlu0.b32.cont [5/16] (narrow) %v47_v14, 32 }
  0x19   :  { %64 = vxpose.xlu0.b32.cont [6/16] (narrow) %v48_v17, 32 }
  0x1d   :  { %65 = vxpose.xlu0.b32.cont [7/16] (narrow) %v49_v20, 32 }
  0x21   :  { %66 = vxpose.xlu0.b32.cont [8/16] (narrow) %v50_v23, 32 }
  0x25   :  { %67 = vxpose.xlu0.b32.cont [9/16] (narrow) %v51_v26, 32 }
  0x29   :  { %68 = vxpose.xlu0.b32.cont [10/16] (narrow) %v52_v29, 32 }
  0x2d   :  { %69 = vxpose.xlu0.b32.cont [11/16] (narrow) %v53_v32, 32 }
  0x31   :  { %70 = vxpose.xlu0.b32.cont [12/16] (narrow) %v54_v35, 32 }
  0x35   :  { %71 = vxpose.xlu0.b32.cont [13/16] (narrow) %v55_v38, 32 }
  0x39   :  { %72 = vxpose.xlu0.b32.cont [14/16] (narrow) %v56_v41, 32 }
  0x3d   :  { %73 = vxpose.xlu0.b32.cont [15/16] (narrow) %v57_v44, 32 }
  0x41   :  { %74 = vxpose.xlu0.b32.end [16/16] (narrow) %v58_v47, 32 }
  0x85   :  { %v75_v48 = vpop.trf.xlu0 }
  0x89   :  { %v76_v49 = vpop.trf.xlu0 }
  0x8a   :  { %v91_v51 = vadd.f32 %v76_v49, %v75_v48 }
  0x8d   :  { %v77_v50 = vpop.trf.xlu0 }
  0x8e   :  { %v92_v52 = vadd.f32 %v91_v51, %v77_v50 }
  0x91   :  { %v78_v53 = vpop.trf.xlu0 }
  0x92   :  { %v93_v54 = vadd.f32 %v92_v52, %v78_v53 }
  0x94   :  { %v94_v55 = vrot.slane %v93_v54, 4 }
  0x96   :  { %v95_v56 = vadd.f32 %v94_v55, %v93_v54 }
  0x98   :  { %v96_v57 = vrot.slane %v95_v56, 2 }
  0x9a   :  { %v97_v58 = vadd.f32 %v96_v57, %v95_v56 }
  0x9c   :  { %v98_v59 = vrot.slane %v97_v58, 1 }
  0x9e   :  { %v99_v60 = vadd.f32 %v98_v59, %v97_v58 }
  0xa0   :  { %100 = vst [vmem:[%s221_s2] sm:$0x1] %v99_v60 }

</bundles_post_ra>
